<compile_context>
chip_gen: v6e
topology: v6e:2x2x1
jax: 0.10.0
libtpu: 0.0.40
codegen_flags: <defaults>
</compile_context>

<pallas_src>
import jax
import jax.numpy as jnp
from jax.experimental import pallas as pl
from jax.experimental.pallas import tpu as pltpu

C_IN = 3456    # = 27 * 128  -> lane-aligned contraction axis
C_OUT = 144    # = 18 * 8    -> sublane-aligned output-channel axis


def conv1x1_kernel(x_ref, w_ref, b_ref, o_ref):
    # x_ref: (M, C_IN) f32 | w_ref: (C_OUT, C_IN) bf16 | b_ref: (1, C_OUT) f32
    # o_ref: (M, C_OUT) f32
    x_bf = x_ref[...].astype(jnp.bfloat16)          # tiny VPU cast (13.8 KB activation)
    acc = jax.lax.dot_general(                      # x @ W.T on the MXU, f32 accumulate
        x_bf, w_ref[...],
        dimension_numbers=(((1,), (1,)), ((), ())),
        preferred_element_type=jnp.float32,
    )
    o_ref[...] = (acc + b_ref[...]).astype(o_ref.dtype)


def prepare_params(weight, bias):
    """One-time parameter prep, OUTSIDE the forward path:
       - drop the trailing 1x1 spatial dims (free reshape, no transpose)
       - cast the weight to bf16 (halves the dominant HBM read)
       - bias kept in f32 as (1, C_OUT) for the in-kernel add."""
    w_prep = weight.reshape(C_OUT, C_IN).astype(jnp.bfloat16)   # [144, 3456] bf16
    b_prep = bias.reshape(1, C_OUT).astype(jnp.float32)         # [1, 144]    f32
    return w_prep, b_prep


@jax.jit
def conv1x1_forward(x_nchw, w_prep, b_prep):
    """x_nchw: [N, C_IN, 1, 1] f32; w_prep: [C_OUT, C_IN] bf16; b_prep: [1, C_OUT] f32."""
    n = x_nchw.shape[0]
    x_mat = x_nchw.reshape(n, C_IN)                             # [N, C_IN]

    flops = 2 * n * C_IN * C_OUT
    bytes_accessed = (
        w_prep.size * w_prep.dtype.itemsize   # dominant: bf16 weight read (~1 MB)
        + x_mat.size * x_mat.dtype.itemsize
        + b_prep.size * b_prep.dtype.itemsize
        + n * C_OUT * 4                       # f32 output write
    )

    out = pl.pallas_call(
        conv1x1_kernel,
        out_shape=jax.ShapeDtypeStruct((n, C_OUT), jnp.float32),
        in_specs=[
            pl.BlockSpec(memory_space=pltpu.MemorySpace.VMEM),  # x  (whole array)
            pl.BlockSpec(memory_space=pltpu.MemorySpace.VMEM),  # W  (whole array)
            pl.BlockSpec(memory_space=pltpu.MemorySpace.VMEM),  # b  (whole array)
        ],
        out_specs=pl.BlockSpec(memory_space=pltpu.MemorySpace.VMEM),
        cost_estimate=pl.CostEstimate(
            flops=flops, transcendentals=0, bytes_accessed=bytes_accessed),
    )(x_mat, w_prep, b_prep)

    return out.reshape(n, C_OUT, 1, 1)                          # back to NCHW


if __name__ == "__main__":
    key = jax.random.PRNGKey(0)
    kx, kw, kb = jax.random.split(key, 3)

    # Input consistent with the module's forward: [1, 3456, 1, 1]
    x = jax.random.normal(kx, (1, C_IN, 1, 1), dtype=jnp.float32)

    # Deterministic PyTorch-like init: uniform(-1/sqrt(fan_in), 1/sqrt(fan_in))
    fan_in = C_IN  # kernel is 1x1
    bound = 1.0 / (fan_in ** 0.5)
    weight = jax.random.uniform(kw, (C_OUT, C_IN, 1, 1), jnp.float32, -bound, bound)
    bias = jax.random.uniform(kb, (C_OUT,), jnp.float32, -bound, bound)

    # One-time prep (layout + bf16 cast) — not part of the per-call forward path.
    w_prep, b_prep = prepare_params(weight, bias)

    y = conv1x1_forward(x, w_prep, b_prep)
    jax.block_until_ready(y)

    # Sanity check against plain-JAX f32 reference (bf16 weights -> loose tolerance).
    ref = (x.reshape(1, C_IN) @ weight.reshape(C_OUT, C_IN).T + bias).reshape(1, C_OUT, 1, 1)
    assert y.shape == (1, C_OUT, 1, 1)
    assert jnp.allclose(y, ref, atol=2e-2, rtol=2e-2), float(jnp.max(jnp.abs(y - ref)))

    print("KERNEL_OK")
</pallas_src>

<mosaic_0001>
module attributes {stable_mosaic.version = 11 : i64} {
  func.func @conv1x1_kernel(%arg0: memref<1x3456xf32, #tpu.memory_space<vmem>>, %arg1: memref<144x3456xbf16, #tpu.memory_space<vmem>>, %arg2: memref<1x144xf32, #tpu.memory_space<vmem>>, %arg3: memref<1x144xf32, #tpu.memory_space<vmem>>) attributes {dimension_semantics = [], scalar_prefetch = 0 : i64, scratch_operands = 0 : i64, tpu.core_type = #tpu.core_type<tc>} {
    %c0 = arith.constant 0 : index
    %c0_0 = arith.constant 0 : index
    %0 = vector.load %arg0[%c0, %c0_0] : memref<1x3456xf32, #tpu.memory_space<vmem>>, vector<1x3456xf32>
    %1 = arith.truncf %0 : vector<1x3456xf32> to vector<1x3456xbf16>
    %c0_1 = arith.constant 0 : index
    %c0_2 = arith.constant 0 : index
    %2 = vector.load %arg1[%c0_1, %c0_2] : memref<144x3456xbf16, #tpu.memory_space<vmem>>, vector<144x3456xbf16>
    %cst = arith.constant dense<0.000000e+00> : vector<1x144xf32>
    %3 = tpu.matmul %1, %2, %cst {dimension_numbers = #tpu.dot_dimension_numbers<[1], [1], [0], [0], [0, 0, 1, 0], [], []>} : vector<1x3456xbf16>, vector<144x3456xbf16>, vector<1x144xf32> -> vector<1x144xf32>
    %c0_3 = arith.constant 0 : index
    %c0_4 = arith.constant 0 : index
    %4 = vector.load %arg2[%c0_3, %c0_4] : memref<1x144xf32, #tpu.memory_space<vmem>>, vector<1x144xf32>
    %5 = arith.addf %3, %4 : vector<1x144xf32>
    %c0_5 = arith.constant 0 : index
    %c0_6 = arith.constant 0 : index
    %6 = vector.load %arg3[%c0_5, %c0_6] : memref<1x144xf32, #tpu.memory_space<vmem>>, vector<1x144xf32>
    tpu.vector_store %arg3[%c0_5, %c0_6], %5 {strides = array<i32>} : memref<1x144xf32, #tpu.memory_space<vmem>>, vector<1x144xf32>,
    return
  }
}

</mosaic_0001>

<bundles_post_ra>
// kernel: conv1x1_forward.1
= control target key start
LH: loop header
LB: loop body
LE: loop exit
PB: predicated region body
PF: predicated region fallthrough
CT: control target
= control target key end

     0   :  { %8 = vsyncpa [#allocation3], 0  ;;  %s3149_s0 = inlined_call_operand.hbm [shape: f32[1,3456], index: 0, kind: input, shape index: {}]   ;;  %s3150_s1 = inlined_call_operand.hbm [shape: bf16[144,3456], index: 1, kind: input, shape index: {}]   ;;  %s3151_s2 = inlined_call_operand.vmem [shape: f32[1,144], index: 2, kind: input, shape index: {}]   ;;  %s3152_s3 = inlined_call_operand.hbm [shape: f32[1,144], index: 3, kind: output, shape index: {}]  }
   0x1   :  { %9 = vsyncpa [#allocation6], 0 }
   0x2   :  { %10 = vsyncpa [#allocation4], 0  ;;  %s2989_s12 = smov [#allocation2]   ;;  %s2990_s14 = smov [#allocation5]  }
   0x3   :  { %s17_s13 = sshll.u32 %s2989_s12, 4  ;;  %s26_s15 = sshll.u32 %s2990_s14, 4  ;;  %s18_s13 = int_to_ptr.vmem [resolvable:$true] %s17_s13  ;;  %s27_s15 = int_to_ptr.vmem [resolvable:$true] %s26_s15 }
   0x4   :  { %s2931_s16 = scalar_lea.vmem %s18_s13, 432  ;;  %s2935_s17 = scalar_lea.vmem %s18_s13, 448 }
   0x5   :  { %p2932_p0 = scmp.ne.s32.totalorder %s18_s13, %s2931_s16  ;;  %p2936_p1 = scmp.lt.s32.totalorder %s18_s13, %s18_s13 }
   0x6   :  { %p2937_p2 = scmp.lt.s32.totalorder %s2935_s17, %s2931_s16 }
   0x8   :  { %p2938_p3 = por %p2937_p2, %p2936_p1 }
   0xa   :  { %p2939_p4 = pnand %p2938_p3, %p2932_p0 }
   0xc   :  { %2942 = shalt.err (!%p2939_p4)
}
   0xd   :  { %20 = dma.hbm_to_vmem [thread:$0]  %s3149_s0, 432, %s18_s13, [#allocation3]  }
   0xe   :  { %s2951_s20 = scalar_lea.vmem %s27_s15, 31104  ;;  %p2956_p6 = scmp.lt.s32.totalorder %s27_s15, %s27_s15 }
   0xf   :  { %p2952_p5 = scmp.ne.s32.totalorder %s27_s15, %s2951_s20  ;;  %p2957_p7 = scmp.lt.s32.totalorder %s2951_s20, %s2951_s20 }
  0x11   :  { %p2958_p8 = por %p2957_p7, %p2956_p6 }
  0x13   :  { %p2959_p9 = pnand %p2958_p8, %p2952_p5 }
  0x15   :  { %2962 = shalt.err (!%p2959_p9)
}
  0x16   :  { %s2991_s21 = smov 1728   ;;  %s2992_s22 = smov 108  }
  0x17   :  { %32 = dma.hbm_to_vmem [thread:$0]  %s3150_s1, 31104, %s27_s15, [#allocation6], %s2991_s21, %s2991_s21, %s2992_s22  }
  0x18   :  { %2983 = dma.done.wait [#allocation3], 432  }
  0x19   :  { %2984 = vsyncadd [#allocation3], 4294966864 }
  0x1a   :  { %2985 = dma.done.wait [#allocation6], 31104  }
  0x1b   :  { %2986 = vsyncadd [#allocation6], 4294936192  ;;  %v2563_v0 = vld [vmem:[#allocation5 + $0x5ec] ss:$108 sps:$4 sm:$0xff]   ;;  %v2565_v1 = vld [vmem:[#allocation5 + $0x5f4] ss:$108 sps:$4 sm:$0xff]   ;;  %v50_v10 = vlaneseq }
  0x1c   :  { %1700 = vmatprep.subr.bf16.mxu0 %v2563_v0  ;;  %v2567_v2 = vld [vmem:[#allocation5 + $0x5e8] ss:$108 sps:$4 sm:$0xff]   ;;  %v2568_v3 = vld [vmem:[#allocation5 + $0x5f0] ss:$108 sps:$4 sm:$0xff]   ;;  %1741 = vmatprep.subr.bf16.mxu1 %v2565_v1  ;;  %v2574_v7 = vld [vmem:[#allocation5 + $0x518] ss:$108 sps:$4 sm:$0xff]  }
  0x1d   :  { %v2569_v4 = vld [vmem:[#allocation5 + $0x514] ss:$108 sps:$4 sm:$0xff]   ;;  %1701 = vmatpush1.bf16.xpose.msra.mxu0 %v2567_v2  ;;  %1742 = vmatpush1.bf16.xpose.msra.mxu1 %v2568_v3  ;;  %v2571_v5 = vld [vmem:[#allocation5 + $0x51c] ss:$108 sps:$4 sm:$0xff]   ;;  %v2577_v9 = vld [vmem:[#allocation5 + $0x444] ss:$108 sps:$4 sm:$0xff]  }
  0x1e   :  { %1702 = vmatprep.subr.bf16.mxu0 %v2569_v4  ;;  %1743 = vmatprep.subr.bf16.mxu1 %v2571_v5  ;;  %v2573_v6 = vld [vmem:[#allocation5 + $0x510] ss:$108 sps:$4 sm:$0xff]   ;;  %v2579_v11 = vld [vmem:[#allocation5 + $0x438] ss:$108 sps:$4 sm:$0xff]   ;;  %v2580_v12 = vld [vmem:[#allocation5 + $0x440] ss:$108 sps:$4 sm:$0xff]  }
  0x1f   :  { %v2575_v8 = vld [vmem:[#allocation5 + $0x43c] ss:$108 sps:$4 sm:$0xff]   ;;  %v2581_v13 = vld [vmem:[#allocation5 + $0x364] ss:$108 sps:$4 sm:$0xff]   ;;  %v2583_v14 = vld [vmem:[#allocation5 + $0x36c] ss:$108 sps:$4 sm:$0xff]  }
  0x20   :  { %v3023_v15 = vshrl.u32 %v50_v10, 7  ;;  %v2585_v18 = vld [vmem:[#allocation5 + $0x360] ss:$108 sps:$4 sm:$0xff]   ;;  %v2586_v19 = vld [vmem:[#allocation5 + $0x368] ss:$108 sps:$4 sm:$0xff]   ;;  %vm2294_vm0 = vcmp.lt.s32.totalorder %v50_v10, 144 }
  0x21   :  { %v3031_v20 = vld [vmem:[#allocation2] sm:$0xff]  ;;  %v2587_v21 = vld [vmem:[#allocation5 + $0x28c] ss:$108 sps:$4 sm:$0xff]   ;;  %v2589_v22 = vld [vmem:[#allocation5 + $0x294] ss:$108 sps:$4 sm:$0xff]  }
  0x22   :  { %v3026_v16 = vsub.s32 1, %v3023_v15  ;;  %v3029_v17 = vsub.s32 3, %v3023_v15  ;;  %v2591_v27 = vld [vmem:[#allocation5 + $0x288] ss:$108 sps:$4 sm:$0xff]   ;;  %v2592_v28 = vld [vmem:[#allocation5 + $0x290] ss:$108 sps:$4 sm:$0xff]  }
  0x23   :  { %v2593_v29 = vld [vmem:[#allocation5 + $0x1b4] ss:$108 sps:$4 sm:$0xff]   ;;  %v2595_v30 = vld [vmem:[#allocation5 + $0x1bc] ss:$108 sps:$4 sm:$0xff]   ;;  %v2598_v32 = vld [vmem:[#allocation5 + $0x1b8] ss:$108 sps:$4 sm:$0xff]  }
  0x24   :  { %v57_v23 = vrot.slane %v3031_v20, %v3026_v16  ;;  %v65_v24 = vrot.slane %v3031_v20, %v3029_v17  ;;  %v2597_v31 = vld [vmem:[#allocation5 + $0x1b0] ss:$108 sps:$4 sm:$0xff]   ;;  %v2603_v35 = vld [vmem:[#allocation5 + $0xd8] ss:$108 sps:$4 sm:$0xff]   ;;  %v2604_v36 = vld [vmem:[#allocation5 + $0xe0] ss:$108 sps:$4 sm:$0xff]  }
  0x25   :  { %1703 = vmatpush1.bf16.xpose.msra.mxu0 %v2573_v6  ;;  %1744 = vmatpush1.bf16.xpose.msra.mxu1 %v2574_v7  ;;  %v2599_v33 = vld [vmem:[#allocation5 + $0xdc] ss:$108 sps:$4 sm:$0xff]   ;;  %v2601_v34 = vld [vmem:[#allocation5 + $0xe4] ss:$108 sps:$4 sm:$0xff]   ;;  %v2607_v38 = vld [vmem:[#allocation5 + $0xc] ss:$108 sps:$4 sm:$0xff]  }
  0x26   :  { %1704 = vmatprep.subr.bf16.mxu0 %v2575_v8  ;;  %1745 = vmatprep.subr.bf16.mxu1 %v2577_v9  ;;  %v186_v25 = vpack.c.bf16 %v57_v23, %v57_v23  ;;  %v188_v26 = vpack.c.bf16 %v65_v24, %v65_v24  ;;  %v2605_v37 = vld [vmem:[#allocation5 + $0x4] ss:$108 sps:$4 sm:$0xff]   ;;  %v2609_v39 = vld [vmem:[#allocation5] ss:$108 sps:$4 sm:$0xff]   ;;  %v2610_v40 = vld [vmem:[#allocation5 + $0x8] ss:$108 sps:$4 sm:$0xff]  }
  0x27   :  { %v2611_v41 = vld [vmem:[#allocation5 + $0x6c4] ss:$108 sps:$4 sm:$0xff]   ;;  %v2613_v42 = vld [vmem:[#allocation5 + $0x6cc] ss:$108 sps:$4 sm:$0xff]   ;;  %v3038_v44 = vsub.s32 0, %v3023_v15  ;;  %v3041_v45 = vsub.s32 2, %v3023_v15 }
  0x28   :  { %1732 = vmatprep.mubr.bf16.mxu0 %v186_v25  ;;  %1773 = vmatprep.mubr.bf16.mxu1 %v188_v26  ;;  %v2615_v43 = vld [vmem:[#allocation5 + $0x6c0] ss:$108 sps:$4 sm:$0xff]   ;;  %v2616_v46 = vld [vmem:[#allocation5 + $0x6c8] ss:$108 sps:$4 sm:$0xff]   ;;  %v2622_v48 = vld [vmem:[#allocation5 + $0x604] ss:$108 sps:$4 sm:$0xff]  }
  0x29   :  { %v2619_v47 = vld [vmem:[#allocation5 + $0x5fc] ss:$108 sps:$4 sm:$0xff]   ;;  %v3044_v49 = vsub.s32 5, %v3023_v15  ;;  %v3047_v50 = vsub.s32 7, %v3023_v15  ;;  %v53_v51 = vrot.slane %v3031_v20, %v3038_v44  ;;  %v61_v52 = vrot.slane %v3031_v20, %v3041_v45  ;;  %v2617_v53 = vld [vmem:[#allocation5 + $0x5f8] ss:$108 sps:$4 sm:$0xff]  }
  0x2a   :  { %v2620_v54 = vld [vmem:[#allocation5 + $0x600] ss:$108 sps:$4 sm:$0xff]   ;;  %v2625_v59 = vld [vmem:[#allocation5 + $0x524] ss:$108 sps:$4 sm:$0xff]   ;;  %v2626_v0 = vld [vmem:[#allocation5 + $0x528] ss:$108 sps:$4 sm:$0xff]  }
  0x2b   :  { %v73_v55 = vrot.slane %v3031_v20, %v3044_v49  ;;  %v81_v56 = vrot.slane %v3031_v20, %v3047_v50  ;;  %v185_v57 = vpack.c.bf16 %v53_v51, %v53_v51  ;;  %v187_v58 = vpack.c.bf16 %v61_v52, %v61_v52  ;;  %v2628_v60 = vld [vmem:[#allocation5 + $0x52c] ss:$108 sps:$4 sm:$0xff]   ;;  %v2634_v2 = vld [vmem:[#allocation5 + $0x454] ss:$108 sps:$4 sm:$0xff]   ;;  %v2632_v4 = vld [vmem:[#allocation5 + $0x450] ss:$108 sps:$4 sm:$0xff]  }
  0x2c   :  { %v2623_v63 = vld [vmem:[#allocation5 + $0x520] ss:$108 sps:$4 sm:$0xff]   ;;  %v2629_v3 = vld [vmem:[#allocation5 + $0x448] ss:$108 sps:$4 sm:$0xff]   ;;  %v2635_v7 = vld [vmem:[#allocation5 + $0x370] ss:$108 sps:$4 sm:$0xff]  }
  0x2d   :  { %1705 = vmatpush1.bf16.xpose.msra.mxu0 %v2579_v11  ;;  %1746 = vmatpush1.bf16.xpose.msra.mxu1 %v2580_v12  ;;  %v190_v61 = vpack.c.bf16 %v73_v55, %v73_v55  ;;  %v192_v62 = vpack.c.bf16 %v81_v56, %v81_v56  ;;  %v2631_v1 = vld [vmem:[#allocation5 + $0x44c] ss:$108 sps:$4 sm:$0xff]   ;;  %v2637_v5 = vld [vmem:[#allocation5 + $0x374] ss:$108 sps:$4 sm:$0xff]   ;;  %v2640_v6 = vld [vmem:[#allocation5 + $0x37c] ss:$108 sps:$4 sm:$0xff]  }
  0x2e   :  { %1706 = vmatprep.subr.bf16.mxu0 %v2581_v13  ;;  %1747 = vmatprep.subr.bf16.mxu1 %v2583_v14  ;;  %v2638_v8 = vld [vmem:[#allocation5 + $0x378] ss:$108 sps:$4 sm:$0xff]   ;;  %v2643_v9 = vld [vmem:[#allocation5 + $0x29c] ss:$108 sps:$4 sm:$0xff]   ;;  %v2644_v13 = vld [vmem:[#allocation5 + $0x2a0] ss:$108 sps:$4 sm:$0xff]  }
  0x2f   :  { %v2646_v11 = vld [vmem:[#allocation5 + $0x2a4] ss:$108 sps:$4 sm:$0xff]   ;;  %v2658_v23 = vld [vmem:[#allocation5 + $0xf4] ss:$108 sps:$4 sm:$0xff]   ;;  %v2682_v52 = vld [vmem:[#allocation5 + $0x53c] ss:$108 sps:$4 sm:$0xff]  }
  0x30   :  { %v2641_v12 = vld [vmem:[#allocation5 + $0x298] ss:$108 sps:$4 sm:$0xff]   ;;  %v2653_v24 = vld [vmem:[#allocation5 + $0xe8] ss:$108 sps:$4 sm:$0xff]   ;;  %v2656_v25 = vld [vmem:[#allocation5 + $0xf0] ss:$108 sps:$4 sm:$0xff]  }
  0x31   :  { %v2649_v14 = vld [vmem:[#allocation5 + $0x1c4] ss:$108 sps:$4 sm:$0xff]   ;;  %v2661_v26 = vld [vmem:[#allocation5 + $0x14] ss:$108 sps:$4 sm:$0xff]   ;;  %v2685_v56 = vld [vmem:[#allocation5 + $0x45c] ss:$108 sps:$4 sm:$0xff]  }
  0x32   :  { %v2679_v51 = vld [vmem:[#allocation5 + $0x534] ss:$108 sps:$4 sm:$0xff]   ;;  %v2680_v55 = vld [vmem:[#allocation5 + $0x538] ss:$108 sps:$4 sm:$0xff]  }
  0x35   :  { %1707 = vmatpush1.bf16.xpose.msra.mxu0 %v2585_v18  ;;  %1748 = vmatpush1.bf16.xpose.msra.mxu1 %v2586_v19  ;;  %v2652_v18 = vld [vmem:[#allocation5 + $0x1cc] ss:$108 sps:$4 sm:$0xff]  }
  0x36   :  { %1708 = vmatprep.subr.bf16.mxu0 %v2587_v21  ;;  %1749 = vmatprep.subr.bf16.mxu1 %v2589_v22  ;;  %v2647_v19 = vld [vmem:[#allocation5 + $0x1c0] ss:$108 sps:$4 sm:$0xff]   ;;  %v2650_v21 = vld [vmem:[#allocation5 + $0x1c8] ss:$108 sps:$4 sm:$0xff]  }
  0x37   :  { %v2655_v22 = vld [vmem:[#allocation5 + $0xec] ss:$108 sps:$4 sm:$0xff]  }
  0x3d   :  { %1709 = vmatpush1.bf16.xpose.msra.mxu0 %v2591_v27  ;;  %1750 = vmatpush1.bf16.xpose.msra.mxu1 %v2592_v28  ;;  %v2664_v27 = vld [vmem:[#allocation5 + $0x1c] ss:$108 sps:$4 sm:$0xff]  }
  0x3e   :  { %1710 = vmatprep.subr.bf16.mxu0 %v2593_v29  ;;  %1751 = vmatprep.subr.bf16.mxu1 %v2595_v30  ;;  %v2659_v28 = vld [vmem:[#allocation5 + $0x10] ss:$108 sps:$4 sm:$0xff]   ;;  %v2662_v29 = vld [vmem:[#allocation5 + $0x18] ss:$108 sps:$4 sm:$0xff]   ;;  %v2667_v30 = vld [vmem:[#allocation5 + $0x6d4] ss:$108 sps:$4 sm:$0xff]  }
  0x45   :  { %1711 = vmatpush1.bf16.xpose.msra.mxu0 %v2597_v31  ;;  %1752 = vmatpush1.bf16.xpose.msra.mxu1 %v2598_v32  ;;  %v2670_v31 = vld [vmem:[#allocation5 + $0x6dc] ss:$108 sps:$4 sm:$0xff]   ;;  %v3058_v32 = vsub.s32 4, %v3023_v15 }
  0x46   :  { %1712 = vmatprep.subr.bf16.mxu0 %v2599_v33  ;;  %1753 = vmatprep.subr.bf16.mxu1 %v2601_v34  ;;  %v3061_v33 = vsub.s32 6, %v3023_v15  ;;  %v2665_v34 = vld [vmem:[#allocation5 + $0x6d0] ss:$108 sps:$4 sm:$0xff]  }
  0x4d   :  { %1713 = vmatpush1.bf16.xpose.msra.mxu0 %v2603_v35  ;;  %1754 = vmatpush1.bf16.xpose.msra.mxu1 %v2604_v36  ;;  %v2668_v35 = vld [vmem:[#allocation5 + $0x6d8] ss:$108 sps:$4 sm:$0xff]  }
  0x4e   :  { %1714 = vmatprep.subr.bf16.mxu0 %v2605_v37  ;;  %1755 = vmatprep.subr.bf16.mxu1 %v2607_v38  ;;  %v2673_v36 = vld [vmem:[#allocation5 + $0x60c] ss:$108 sps:$4 sm:$0xff]   ;;  %v2676_v37 = vld [vmem:[#allocation5 + $0x614] ss:$108 sps:$4 sm:$0xff]   ;;  %v69_v38 = vrot.slane %v3031_v20, %v3058_v32 }
  0x55   :  { %1715 = vmatpush1.bf16.xpose.msra.mxu0 %v2609_v39  ;;  %1756 = vmatpush1.bf16.xpose.msra.mxu1 %v2610_v40  ;;  %v77_v39 = vrot.slane %v3031_v20, %v3061_v33  ;;  %v3067_v40 = vld [vmem:[#allocation2 + $0x8] sm:$0xff] }
  0x56   :  { %1730 = vmatprep.subr.bf16.mxu0 %v2611_v41  ;;  %1771 = vmatprep.subr.bf16.mxu1 %v2613_v42  ;;  %v89_v41 = vrot.slane %v3067_v40, %v3026_v16  ;;  %v97_v42 = vrot.slane %v3067_v40, %v3029_v17 }
  0x58   :  { %v196_v20 = vpack.c.bf16 %v97_v42, %v97_v42  ;;  %v2731_v42 = vld [vmem:[#allocation5 + $0x540] ss:$108 sps:$4 sm:$0xff]  }
  0x5d   :  { %1731 = vmatpush2.bf16.xpose.msra.mxu0 %v2615_v43  ;;  %1772 = vmatpush2.bf16.xpose.msra.mxu1 %v2616_v46  ;;  %v189_v43 = vpack.c.bf16 %v69_v38, %v69_v38  ;;  %v191_v46 = vpack.c.bf16 %v77_v39, %v77_v39  ;;  %v2736_v38 = vld [vmem:[#allocation5 + $0x54c] ss:$108 sps:$4 sm:$0xff]  }
  0x5e   :  { %1782 = vmatprep.subr.bf16.mxu0 %v2619_v47  ;;  %1823 = vmatprep.subr.bf16.mxu1 %v2622_v48  ;;  %v2671_v47 = vld [vmem:[#allocation5 + $0x608] ss:$108 sps:$4 sm:$0xff]   ;;  %v2674_v48 = vld [vmem:[#allocation5 + $0x610] ss:$108 sps:$4 sm:$0xff]  }
  0x64   :  { %1733 = vmatmul.mubr.bf16.vlgmr.msra.gmra.mxu0 %v185_v57  ;;  %1774 = vmatmul.mubr.bf16.vlgmr.msra.gmra.mxu1 %v187_v58  ;;  %v2688_v57 = vld [vmem:[#allocation5 + $0x464] ss:$108 sps:$4 sm:$0xff]  }
  0x65   :  { %1783 = vmatpush1.bf16.xpose.msra.mxu0 %v2617_v53  ;;  %1824 = vmatpush1.bf16.xpose.msra.mxu1 %v2620_v54  ;;  %v194_v53 = vpack.c.bf16 %v89_v41, %v89_v41  ;;  %v2677_v54 = vld [vmem:[#allocation5 + $0x530] ss:$108 sps:$4 sm:$0xff]   ;;  %v2683_v58 = vld [vmem:[#allocation5 + $0x458] ss:$108 sps:$4 sm:$0xff]  }
  0x66   :  { %1784 = vmatprep.subr.bf16.mxu0 %v2625_v59  ;;  %1825 = vmatprep.subr.bf16.mxu1 %v2628_v60  ;;  %v2686_v59 = vld [vmem:[#allocation5 + $0x460] ss:$108 sps:$4 sm:$0xff]   ;;  %v2691_v60 = vld [vmem:[#allocation5 + $0x384] ss:$108 sps:$4 sm:$0xff]  }
  0x67   :  { %1814 = vmatprep.mubr.bf16.mxu0 %v190_v61  ;;  %1855 = vmatprep.mubr.bf16.mxu1 %v192_v62  ;;  %v2694_v61 = vld [vmem:[#allocation5 + $0x38c] ss:$108 sps:$4 sm:$0xff]  }
  0x68   :  { %v2689_v62 = vld [vmem:[#allocation5 + $0x380] ss:$108 sps:$4 sm:$0xff]  }
  0x6d   :  { %1785 = vmatpush1.bf16.xpose.msra.mxu0 %v2623_v63  ;;  %1826 = vmatpush1.bf16.xpose.msra.mxu1 %v2626_v0  ;;  %v2692_v63 = vld [vmem:[#allocation5 + $0x388] ss:$108 sps:$4 sm:$0xff]   ;;  %v2697_v0 = vld [vmem:[#allocation5 + $0x2ac] ss:$108 sps:$4 sm:$0xff]  }
  0x6e   :  { %1786 = vmatprep.subr.bf16.mxu0 %v2631_v1  ;;  %1827 = vmatprep.subr.bf16.mxu1 %v2634_v2  ;;  %v2700_v1 = vld [vmem:[#allocation5 + $0x2b4] ss:$108 sps:$4 sm:$0xff]  }
  0x6f   :  { %v2695_v2 = vld [vmem:[#allocation5 + $0x2a8] ss:$108 sps:$4 sm:$0xff]  }
  0x75   :  { %1787 = vmatpush1.bf16.xpose.msra.mxu0 %v2629_v3  ;;  %1828 = vmatpush1.bf16.xpose.msra.mxu1 %v2632_v4  ;;  %v2698_v3 = vld [vmem:[#allocation5 + $0x2b0] ss:$108 sps:$4 sm:$0xff]   ;;  %v2703_v4 = vld [vmem:[#allocation5 + $0x1d4] ss:$108 sps:$4 sm:$0xff]  }
  0x76   :  { %1788 = vmatprep.subr.bf16.mxu0 %v2637_v5  ;;  %1829 = vmatprep.subr.bf16.mxu1 %v2640_v6  ;;  %v2706_v5 = vld [vmem:[#allocation5 + $0x1dc] ss:$108 sps:$4 sm:$0xff]  }
  0x77   :  { %v2701_v6 = vld [vmem:[#allocation5 + $0x1d0] ss:$108 sps:$4 sm:$0xff]  }
  0x7d   :  { %1789 = vmatpush1.bf16.xpose.msra.mxu0 %v2635_v7  ;;  %1830 = vmatpush1.bf16.xpose.msra.mxu1 %v2638_v8  ;;  %v2704_v7 = vld [vmem:[#allocation5 + $0x1d8] ss:$108 sps:$4 sm:$0xff]   ;;  %v2709_v8 = vld [vmem:[#allocation5 + $0xfc] ss:$108 sps:$4 sm:$0xff]  }
  0x7e   :  { %1790 = vmatprep.subr.bf16.mxu0 %v2643_v9  ;;  %1831 = vmatprep.subr.bf16.mxu1 %v2646_v11  ;;  %v2712_v9 = vld [vmem:[#allocation5 + $0x104] ss:$108 sps:$4 sm:$0xff]  }
  0x7f   :  { %v2707_v11 = vld [vmem:[#allocation5 + $0xf8] ss:$108 sps:$4 sm:$0xff]  }
  0x85   :  { %1791 = vmatpush1.bf16.xpose.msra.mxu0 %v2641_v12  ;;  %1832 = vmatpush1.bf16.xpose.msra.mxu1 %v2644_v13  ;;  %v2710_v12 = vld [vmem:[#allocation5 + $0x100] ss:$108 sps:$4 sm:$0xff]   ;;  %v2715_v13 = vld [vmem:[#allocation5 + $0x24] ss:$108 sps:$4 sm:$0xff]  }
  0x86   :  { %1792 = vmatprep.subr.bf16.mxu0 %v2649_v14  ;;  %1833 = vmatprep.subr.bf16.mxu1 %v2652_v18  ;;  %v2718_v14 = vld [vmem:[#allocation5 + $0x2c] ss:$108 sps:$4 sm:$0xff]  }
  0x87   :  { %v2713_v18 = vld [vmem:[#allocation5 + $0x20] ss:$108 sps:$4 sm:$0xff]  }
  0x8d   :  { %1793 = vmatpush1.bf16.xpose.msra.mxu0 %v2647_v19  ;;  %1834 = vmatpush1.bf16.xpose.msra.mxu1 %v2650_v21  ;;  %v2716_v19 = vld [vmem:[#allocation5 + $0x28] ss:$108 sps:$4 sm:$0xff]   ;;  %v2721_v21 = vld [vmem:[#allocation5 + $0x6e4] ss:$108 sps:$4 sm:$0xff]  }
  0x8e   :  { %1794 = vmatprep.subr.bf16.mxu0 %v2655_v22  ;;  %1835 = vmatprep.subr.bf16.mxu1 %v2658_v23  ;;  %v2724_v22 = vld [vmem:[#allocation5 + $0x6ec] ss:$108 sps:$4 sm:$0xff]  }
  0x8f   :  { %v2719_v23 = vld [vmem:[#allocation5 + $0x6e0] ss:$108 sps:$4 sm:$0xff]  }
  0x95   :  { %1795 = vmatpush1.bf16.xpose.msra.mxu0 %v2653_v24  ;;  %1836 = vmatpush1.bf16.xpose.msra.mxu1 %v2656_v25  ;;  %v2722_v24 = vld [vmem:[#allocation5 + $0x6e8] ss:$108 sps:$4 sm:$0xff]  }
  0x96   :  { %1796 = vmatprep.subr.bf16.mxu0 %v2661_v26  ;;  %1837 = vmatprep.subr.bf16.mxu1 %v2664_v27  ;;  %v2727_v25 = vld [vmem:[#allocation5 + $0x61c] ss:$108 sps:$4 sm:$0xff]   ;;  %v2730_v26 = vld [vmem:[#allocation5 + $0x624] ss:$108 sps:$4 sm:$0xff]   ;;  %v85_v27 = vrot.slane %v3067_v40, %v3038_v44 }
  0x9d   :  { %1797 = vmatpush1.bf16.xpose.msra.mxu0 %v2659_v28  ;;  %1838 = vmatpush1.bf16.xpose.msra.mxu1 %v2662_v29  ;;  %v93_v28 = vrot.slane %v3067_v40, %v3041_v45  ;;  %v105_v29 = vrot.slane %v3067_v40, %v3044_v49 }
  0x9e   :  { %1812 = vmatprep.subr.bf16.mxu0 %v2667_v30  ;;  %1853 = vmatprep.subr.bf16.mxu1 %v2670_v31  ;;  %v113_v30 = vrot.slane %v3067_v40, %v3047_v50  ;;  %v193_v31 = vpack.c.bf16 %v85_v27, %v85_v27  ;;  %v2775_v27 = vld [vmem:[#allocation5 + $0x6f4] ss:$108 sps:$4 sm:$0xff]  }
  0x9f   :  { %v198_v39 = vpack.c.bf16 %v105_v29, %v105_v29  ;;  %v2773_v29 = vld [vmem:[#allocation5 + $0x6f0] ss:$108 sps:$4 sm:$0xff]  }
  0xa0   :  { %v200_v41 = vpack.c.bf16 %v113_v30, %v113_v30  ;;  %v2776_v30 = vld [vmem:[#allocation5 + $0x6f8] ss:$108 sps:$4 sm:$0xff]  }
  0xa5   :  { %1813 = vmatpush2.bf16.xpose.msra.mxu0 %v2665_v34  ;;  %1854 = vmatpush2.bf16.xpose.msra.mxu1 %v2668_v35  ;;  %v195_v34 = vpack.c.bf16 %v93_v28, %v93_v28  ;;  %v2725_v35 = vld [vmem:[#allocation5 + $0x618] ss:$108 sps:$4 sm:$0xff]   ;;  %v2778_v28 = vld [vmem:[#allocation5 + $0x6fc] ss:$108 sps:$4 sm:$0xff]  }
  0xa6   :  { %1864 = vmatprep.subr.bf16.mxu0 %v2673_v36  ;;  %1905 = vmatprep.subr.bf16.mxu1 %v2676_v37  ;;  %v2728_v36 = vld [vmem:[#allocation5 + $0x620] ss:$108 sps:$4 sm:$0xff]   ;;  %v2733_v37 = vld [vmem:[#allocation5 + $0x544] ss:$108 sps:$4 sm:$0xff]  }
  0xac   :  { %1815 = vmatmul.mubr.bf16.vlgmr.msra.gmra.mxu0 %v189_v43  ;;  %1856 = vmatmul.mubr.bf16.vlgmr.msra.gmra.mxu1 %v191_v46  ;;  %v2734_v43 = vld [vmem:[#allocation5 + $0x548] ss:$108 sps:$4 sm:$0xff]   ;;  %v2739_v46 = vld [vmem:[#allocation5 + $0x46c] ss:$108 sps:$4 sm:$0xff]  }
  0xad   :  { %1865 = vmatpush1.bf16.xpose.msra.mxu0 %v2671_v47  ;;  %1906 = vmatpush1.bf16.xpose.msra.mxu1 %v2674_v48  ;;  %v2742_v47 = vld [vmem:[#allocation5 + $0x474] ss:$108 sps:$4 sm:$0xff]  }
  0xae   :  { %1866 = vmatprep.subr.bf16.mxu0 %v2679_v51  ;;  %1907 = vmatprep.subr.bf16.mxu1 %v2682_v52  ;;  %v2737_v48 = vld [vmem:[#allocation5 + $0x468] ss:$108 sps:$4 sm:$0xff]   ;;  %v2740_v51 = vld [vmem:[#allocation5 + $0x470] ss:$108 sps:$4 sm:$0xff]  }
  0xaf   :  { %1896 = vmatprep.mubr.bf16.mxu0 %v194_v53  ;;  %1937 = vmatprep.mubr.bf16.mxu1 %v196_v20  ;;  %v2745_v52 = vld [vmem:[#allocation5 + $0x394] ss:$108 sps:$4 sm:$0xff]   ;;  %v2748_v53 = vld [vmem:[#allocation5 + $0x39c] ss:$108 sps:$4 sm:$0xff]  }
  0xb0   :  { %v2743_v20 = vld [vmem:[#allocation5 + $0x390] ss:$108 sps:$4 sm:$0xff]  }
  0xb5   :  { %1867 = vmatpush1.bf16.xpose.msra.mxu0 %v2677_v54  ;;  %1908 = vmatpush1.bf16.xpose.msra.mxu1 %v2680_v55  ;;  %v2746_v54 = vld [vmem:[#allocation5 + $0x398] ss:$108 sps:$4 sm:$0xff]   ;;  %v2751_v55 = vld [vmem:[#allocation5 + $0x2bc] ss:$108 sps:$4 sm:$0xff]  }
  0xb6   :  { %1868 = vmatprep.subr.bf16.mxu0 %v2685_v56  ;;  %1909 = vmatprep.subr.bf16.mxu1 %v2688_v57  ;;  %v2754_v56 = vld [vmem:[#allocation5 + $0x2c4] ss:$108 sps:$4 sm:$0xff]  }
  0xb7   :  { %v2749_v57 = vld [vmem:[#allocation5 + $0x2b8] ss:$108 sps:$4 sm:$0xff]  }
  0xbd   :  { %1869 = vmatpush1.bf16.xpose.msra.mxu0 %v2683_v58  ;;  %1910 = vmatpush1.bf16.xpose.msra.mxu1 %v2686_v59  ;;  %v2752_v58 = vld [vmem:[#allocation5 + $0x2c0] ss:$108 sps:$4 sm:$0xff]   ;;  %v2757_v59 = vld [vmem:[#allocation5 + $0x1e4] ss:$108 sps:$4 sm:$0xff]  }
  0xbe   :  { %1870 = vmatprep.subr.bf16.mxu0 %v2691_v60  ;;  %1911 = vmatprep.subr.bf16.mxu1 %v2694_v61  ;;  %v2760_v60 = vld [vmem:[#allocation5 + $0x1ec] ss:$108 sps:$4 sm:$0xff]  }
  0xbf   :  { %v2755_v61 = vld [vmem:[#allocation5 + $0x1e0] ss:$108 sps:$4 sm:$0xff]  }
  0xc5   :  { %1871 = vmatpush1.bf16.xpose.msra.mxu0 %v2689_v62  ;;  %1912 = vmatpush1.bf16.xpose.msra.mxu1 %v2692_v63  ;;  %v2758_v62 = vld [vmem:[#allocation5 + $0x1e8] ss:$108 sps:$4 sm:$0xff]   ;;  %v2763_v63 = vld [vmem:[#allocation5 + $0x10c] ss:$108 sps:$4 sm:$0xff]  }
  0xc6   :  { %1872 = vmatprep.subr.bf16.mxu0 %v2697_v0  ;;  %1913 = vmatprep.subr.bf16.mxu1 %v2700_v1  ;;  %v2766_v0 = vld [vmem:[#allocation5 + $0x114] ss:$108 sps:$4 sm:$0xff]   ;;  %v464_v1 = vld [vmem:[%s3151_s2] sm:$0x3]  ;;  %s2995_s2 = smov [#allocation7]  }
  0xc7   :  { %s2303_s25 = sshll.u32 %s2995_s2, 4  ;;  %s2304_s25 = int_to_ptr.vmem [resolvable:$true] %s2303_s25 }
  0xc8   :  { %s2963_s26 = scalar_lea.vmem %s2304_s25, 32  ;;  %p2968_p11 = scmp.lt.s32.totalorder %s2304_s25, %s2304_s25 }
  0xc9   :  { %p2964_p10 = scmp.ne.s32.totalorder %s2304_s25, %s2963_s26  ;;  %p2969_p12 = scmp.lt.s32.totalorder %s2963_s26, %s2963_s26 }
  0xcb   :  { %p2970_p13 = por %p2969_p12, %p2968_p11 }
  0xcd   :  { %1873 = vmatpush1.bf16.xpose.msra.mxu0 %v2695_v2  ;;  %1914 = vmatpush1.bf16.xpose.msra.mxu1 %v2698_v3  ;;  %v1693_v2 = vrot.slane %v464_v1, %v3038_v44  ;;  %v2761_v3 = vld [vmem:[#allocation5 + $0x108] ss:$108 sps:$4 sm:$0xff]   ;;  %p2971_p0 = pnand %p2970_p13, %p2964_p10 }
  0xce   :  { %1874 = vmatprep.subr.bf16.mxu0 %v2703_v4  ;;  %1915 = vmatprep.subr.bf16.mxu1 %v2706_v5  ;;  %v2764_v4 = vld [vmem:[#allocation5 + $0x110] ss:$108 sps:$4 sm:$0xff]   ;;  %v2769_v5 = vld [vmem:[#allocation5 + $0x34] ss:$108 sps:$4 sm:$0xff]  }
  0xd5   :  { %1875 = vmatpush1.bf16.xpose.msra.mxu0 %v2701_v6  ;;  %1916 = vmatpush1.bf16.xpose.msra.mxu1 %v2704_v7  ;;  %v2772_v6 = vld [vmem:[#allocation5 + $0x3c] ss:$108 sps:$4 sm:$0xff]   ;;  %v1697_v7 = vrot.slane %v464_v1, %v3026_v16 }
  0xd6   :  { %1876 = vmatprep.subr.bf16.mxu0 %v2709_v8  ;;  %1917 = vmatprep.subr.bf16.mxu1 %v2712_v9  ;;  %v2814_v1 = vld [vmem:[#allocation5 + $0x1fc] ss:$108 sps:$4 sm:$0xff]  }
  0xdd   :  { %1877 = vmatpush1.bf16.xpose.msra.mxu0 %v2707_v11  ;;  %1918 = vmatpush1.bf16.xpose.msra.mxu1 %v2710_v12 }
  0xde   :  { %1878 = vmatprep.subr.bf16.mxu0 %v2715_v13  ;;  %1919 = vmatprep.subr.bf16.mxu1 %v2718_v14 }
  0xe5   :  { %1879 = vmatpush1.bf16.xpose.msra.mxu0 %v2713_v18  ;;  %1920 = vmatpush1.bf16.xpose.msra.mxu1 %v2716_v19 }
  0xe6   :  { %1894 = vmatprep.subr.bf16.mxu0 %v2721_v21  ;;  %1935 = vmatprep.subr.bf16.mxu1 %v2724_v22 }
  0xed   :  { %1895 = vmatpush2.bf16.xpose.msra.mxu0 %v2719_v23  ;;  %1936 = vmatpush2.bf16.xpose.msra.mxu1 %v2722_v24  ;;  %v2767_v23 = vld [vmem:[#allocation5 + $0x30] ss:$108 sps:$4 sm:$0xff]   ;;  %v2770_v24 = vld [vmem:[#allocation5 + $0x38] ss:$108 sps:$4 sm:$0xff]  }
  0xee   :  { %1946 = vmatprep.subr.bf16.mxu0 %v2727_v25  ;;  %1987 = vmatprep.subr.bf16.mxu1 %v2730_v26 }
  0xf4   :  { %1897 = vmatmul.mubr.bf16.vlgmr.msra.gmra.mxu0 %v193_v31  ;;  %1938 = vmatmul.mubr.bf16.vlgmr.msra.gmra.mxu1 %v195_v34  ;;  %v2781_v31 = vld [vmem:[#allocation5 + $0x62c] ss:$108 sps:$4 sm:$0xff]   ;;  %v2784_v34 = vld [vmem:[#allocation5 + $0x634] ss:$108 sps:$4 sm:$0xff]  }
  0xf5   :  { %1947 = vmatpush1.bf16.xpose.msra.mxu0 %v2725_v35  ;;  %1988 = vmatpush1.bf16.xpose.msra.mxu1 %v2728_v36  ;;  %v101_v35 = vrot.slane %v3067_v40, %v3058_v32  ;;  %v109_v36 = vrot.slane %v3067_v40, %v3061_v33 }
  0xf6   :  { %1948 = vmatprep.subr.bf16.mxu0 %v2733_v37  ;;  %1989 = vmatprep.subr.bf16.mxu1 %v2736_v38  ;;  %v3094_v37 = vld [vmem:[#allocation2 + $0x10] sm:$0xff] }
  0xf7   :  { %1978 = vmatprep.mubr.bf16.mxu0 %v198_v39  ;;  %2019 = vmatprep.mubr.bf16.mxu1 %v200_v41  ;;  %v121_v38 = vrot.slane %v3094_v37, %v3026_v16  ;;  %v129_v39 = vrot.slane %v3094_v37, %v3029_v17  ;;  %v197_v41 = vpack.c.bf16 %v101_v35, %v101_v35  ;;  %v2796_v17 = vld [vmem:[#allocation5 + $0x484] ss:$108 sps:$4 sm:$0xff]   ;;  %v2830_v35 = vld [vmem:[#allocation5 + $0x708] ss:$108 sps:$4 sm:$0xff]  }
  0xf9   :  { %v204_v40 = vpack.c.bf16 %v129_v39, %v129_v39  ;;  %v125_v39 = vrot.slane %v3094_v37, %v3041_v45 }
  0xfd   :  { %1949 = vmatpush1.bf16.xpose.msra.mxu0 %v2731_v42  ;;  %1990 = vmatpush1.bf16.xpose.msra.mxu1 %v2734_v43  ;;  %v199_v42 = vpack.c.bf16 %v109_v36, %v109_v36  ;;  %v2779_v43 = vld [vmem:[#allocation5 + $0x628] ss:$108 sps:$4 sm:$0xff]  }
  0xfe   :  { %1950 = vmatprep.subr.bf16.mxu0 %v2739_v46  ;;  %1991 = vmatprep.subr.bf16.mxu1 %v2742_v47  ;;  %v2782_v46 = vld [vmem:[#allocation5 + $0x630] ss:$108 sps:$4 sm:$0xff]   ;;  %v2787_v47 = vld [vmem:[#allocation5 + $0x554] ss:$108 sps:$4 sm:$0xff]  }
  0xff   :  { %v2835_v36 = vld [vmem:[#allocation5 + $0x63c] ss:$108 sps:$4 sm:$0xff]  }
 0x105   :  { %1951 = vmatpush1.bf16.xpose.msra.mxu0 %v2737_v48  ;;  %1992 = vmatpush1.bf16.xpose.msra.mxu1 %v2740_v51  ;;  %v2790_v48 = vld [vmem:[#allocation5 + $0x55c] ss:$108 sps:$4 sm:$0xff]   ;;  %v202_v51 = vpack.c.bf16 %v121_v38, %v121_v38  ;;  %v2838_v38 = vld [vmem:[#allocation5 + $0x644] ss:$108 sps:$4 sm:$0xff]  }
 0x106   :  { %1952 = vmatprep.subr.bf16.mxu0 %v2745_v52  ;;  %1993 = vmatprep.subr.bf16.mxu1 %v2748_v53  ;;  %v2785_v52 = vld [vmem:[#allocation5 + $0x550] ss:$108 sps:$4 sm:$0xff]   ;;  %v2788_v53 = vld [vmem:[#allocation5 + $0x558] ss:$108 sps:$4 sm:$0xff]  }
 0x10d   :  { %1953 = vmatpush1.bf16.xpose.msra.mxu0 %v2743_v20  ;;  %1994 = vmatpush1.bf16.xpose.msra.mxu1 %v2746_v54  ;;  %v2793_v20 = vld [vmem:[#allocation5 + $0x47c] ss:$108 sps:$4 sm:$0xff]   ;;  %v2791_v54 = vld [vmem:[#allocation5 + $0x478] ss:$108 sps:$4 sm:$0xff]  }
 0x10e   :  { %1954 = vmatprep.subr.bf16.mxu0 %v2751_v55  ;;  %1995 = vmatprep.subr.bf16.mxu1 %v2754_v56  ;;  %v2794_v55 = vld [vmem:[#allocation5 + $0x480] ss:$108 sps:$4 sm:$0xff]   ;;  %v2799_v56 = vld [vmem:[#allocation5 + $0x3a4] ss:$108 sps:$4 sm:$0xff]  }
 0x115   :  { %1955 = vmatpush1.bf16.xpose.msra.mxu0 %v2749_v57  ;;  %1996 = vmatpush1.bf16.xpose.msra.mxu1 %v2752_v58  ;;  %v2802_v57 = vld [vmem:[#allocation5 + $0x3ac] ss:$108 sps:$4 sm:$0xff]  }
 0x116   :  { %1956 = vmatprep.subr.bf16.mxu0 %v2757_v59  ;;  %1997 = vmatprep.subr.bf16.mxu1 %v2760_v60  ;;  %v2797_v58 = vld [vmem:[#allocation5 + $0x3a0] ss:$108 sps:$4 sm:$0xff]   ;;  %v2800_v59 = vld [vmem:[#allocation5 + $0x3a8] ss:$108 sps:$4 sm:$0xff]  }
 0x117   :  { %v2805_v60 = vld [vmem:[#allocation5 + $0x2cc] ss:$108 sps:$4 sm:$0xff]  }
 0x11d   :  { %1957 = vmatpush1.bf16.xpose.msra.mxu0 %v2755_v61  ;;  %1998 = vmatpush1.bf16.xpose.msra.mxu1 %v2758_v62  ;;  %v2808_v61 = vld [vmem:[#allocation5 + $0x2d4] ss:$108 sps:$4 sm:$0xff]  }
 0x11e   :  { %1958 = vmatprep.subr.bf16.mxu0 %v2763_v63  ;;  %1999 = vmatprep.subr.bf16.mxu1 %v2766_v0  ;;  %v2803_v62 = vld [vmem:[#allocation5 + $0x2c8] ss:$108 sps:$4 sm:$0xff]   ;;  %v2806_v63 = vld [vmem:[#allocation5 + $0x2d0] ss:$108 sps:$4 sm:$0xff]  }
 0x11f   :  { %v2811_v0 = vld [vmem:[#allocation5 + $0x1f4] ss:$108 sps:$4 sm:$0xff]  }
 0x124   :  { %v1734_v8 = vpop.f32.mrf.mxu0  ;;  %v1775_v9 = vpop.f32.mrf.mxu1 }
 0x125   :  { %v1735_v11 = vadd.f32 %v1734_v8, %v1693_v2  ;;  %1959 = vmatpush1.bf16.xpose.msra.mxu0 %v2761_v3  ;;  %2000 = vmatpush1.bf16.xpose.msra.mxu1 %v2764_v4  ;;  %v2809_v2 = vld [vmem:[#allocation5 + $0x1f0] ss:$108 sps:$4 sm:$0xff]   ;;  %v2812_v3 = vld [vmem:[#allocation5 + $0x1f8] ss:$108 sps:$4 sm:$0xff]  }
 0x126   :  { %v1736_v12 = vpop.f32.mrf.mxu0  ;;  %v1777_v13 = vpop.f32.mrf.mxu1  ;;  %1960 = vmatprep.subr.bf16.mxu0 %v2769_v5  ;;  %2001 = vmatprep.subr.bf16.mxu1 %v2772_v6  ;;  %v2817_v4 = vld [vmem:[#allocation5 + $0x11c] ss:$108 sps:$4 sm:$0xff]   ;;  %v2820_v5 = vld [vmem:[#allocation5 + $0x124] ss:$108 sps:$4 sm:$0xff]  }
 0x127   :  { %v3086_v14 = vadd.f32 %v1775_v9, %v1735_v11  ;;  %v1737_v18 = vadd.f32 %v1736_v12, %v1697_v7  ;;  %v2815_v6 = vld [vmem:[#allocation5 + $0x118] ss:$108 sps:$4 sm:$0xff]   ;;  %v2818_v7 = vld [vmem:[#allocation5 + $0x120] ss:$108 sps:$4 sm:$0xff]  }
 0x128   :  { %v1738_v19 = vpop.f32.mrf.mxu0  ;;  %v1779_v21 = vpop.f32.mrf.mxu1  ;;  %v2823_v8 = vld [vmem:[#allocation5 + $0x44] ss:$108 sps:$4 sm:$0xff]   ;;  %v2826_v9 = vld [vmem:[#allocation5 + $0x4c] ss:$108 sps:$4 sm:$0xff]  }
 0x129   :  { %v3088_v22 = vadd.f32 %v1777_v13, %v1737_v18 }
 0x12a   :  { %v1739_v25 = vpop.f32.mrf.mxu0  ;;  %v1780_v26 = vpop.f32.mrf.mxu1 }
 0x12d   :  { %1961 = vmatpush1.bf16.xpose.msra.mxu0 %v2767_v23  ;;  %2002 = vmatpush1.bf16.xpose.msra.mxu1 %v2770_v24 }
 0x12e   :  { %1976 = vmatprep.subr.bf16.mxu0 %v2775_v27  ;;  %2017 = vmatprep.subr.bf16.mxu1 %v2778_v28  ;;  %v2821_v27 = vld [vmem:[#allocation5 + $0x40] ss:$108 sps:$4 sm:$0xff]   ;;  %v2824_v28 = vld [vmem:[#allocation5 + $0x48] ss:$108 sps:$4 sm:$0xff]  }
 0x135   :  { %1977 = vmatpush2.bf16.xpose.msra.mxu0 %v2773_v29  ;;  %2018 = vmatpush2.bf16.xpose.msra.mxu1 %v2776_v30 }
 0x136   :  { %2028 = vmatprep.subr.bf16.mxu0 %v2781_v31  ;;  %2069 = vmatprep.subr.bf16.mxu1 %v2784_v34  ;;  %v2829_v31 = vld [vmem:[#allocation5 + $0x704] ss:$108 sps:$4 sm:$0xff]   ;;  %v2827_v34 = vld [vmem:[#allocation5 + $0x700] ss:$108 sps:$4 sm:$0xff]  }
 0x13c   :  { %1979 = vmatmul.mubr.bf16.vlgmr.msra.gmra.mxu0 %v197_v41  ;;  %2020 = vmatmul.mubr.bf16.vlgmr.msra.gmra.mxu1 %v199_v42  ;;  %v137_v41 = vrot.slane %v3094_v37, %v3044_v49  ;;  %v145_v42 = vrot.slane %v3094_v37, %v3047_v50  ;;  %v2839_v49 = vld [vmem:[#allocation5 + $0x560] ss:$108 sps:$4 sm:$0xff]  }
 0x13d   :  { %2029 = vmatpush1.bf16.xpose.msra.mxu0 %v2779_v43  ;;  %2070 = vmatpush1.bf16.xpose.msra.mxu1 %v2782_v46  ;;  %v203_v46 = vpack.c.bf16 %v125_v39, %v125_v39  ;;  %v2850_v50 = vld [vmem:[#allocation5 + $0x494] ss:$108 sps:$4 sm:$0xff]   ;;  %v3124_v39 = vld [vmem:[#allocation2 + $0x18] sm:$0x7] }
 0x13e   :  { %2030 = vmatprep.subr.bf16.mxu0 %v2787_v47  ;;  %2071 = vmatprep.subr.bf16.mxu1 %v2790_v48  ;;  %v2833_v47 = vld [vmem:[#allocation5 + $0x638] ss:$108 sps:$4 sm:$0xff]   ;;  %v2836_v48 = vld [vmem:[#allocation5 + $0x640] ss:$108 sps:$4 sm:$0xff]  }
 0x13f   :  { %2060 = vmatprep.mubr.bf16.mxu0 %v202_v51  ;;  %2101 = vmatprep.mubr.bf16.mxu1 %v204_v40  ;;  %v2841_v51 = vld [vmem:[#allocation5 + $0x564] ss:$108 sps:$4 sm:$0xff]   ;;  %v2844_v40 = vld [vmem:[#allocation5 + $0x56c] ss:$108 sps:$4 sm:$0xff]  }
 0x145   :  { %2031 = vmatpush1.bf16.xpose.msra.mxu0 %v2785_v52  ;;  %2072 = vmatpush1.bf16.xpose.msra.mxu1 %v2788_v53  ;;  %v206_v52 = vpack.c.bf16 %v137_v41, %v137_v41  ;;  %v208_v53 = vpack.c.bf16 %v145_v42, %v145_v42  ;;  %v2993_v41 = vmov 0   ;;  %v153_v42 = vrot.slane %v3124_v39, %v3026_v16  ;;  %v2895_v16 = vld [vmem:[#allocation5 + $0x498] ss:$108 sps:$4 sm:$0xff]  }
 0x146   :  { %2032 = vmatprep.subr.bf16.mxu0 %v2793_v20  ;;  %2073 = vmatprep.subr.bf16.mxu1 %v2796_v17  ;;  %v2842_v20 = vld [vmem:[#allocation5 + $0x568] ss:$108 sps:$4 sm:$0xff]   ;;  %v2847_v17 = vld [vmem:[#allocation5 + $0x48c] ss:$108 sps:$4 sm:$0xff]  }
 0x14d   :  { %2033 = vmatpush1.bf16.xpose.msra.mxu0 %v2791_v54  ;;  %2074 = vmatpush1.bf16.xpose.msra.mxu1 %v2794_v55  ;;  %v2845_v54 = vld [vmem:[#allocation5 + $0x488] ss:$108 sps:$4 sm:$0xff]   ;;  %v2848_v55 = vld [vmem:[#allocation5 + $0x490] ss:$108 sps:$4 sm:$0xff]  }
 0x14e   :  { %2034 = vmatprep.subr.bf16.mxu0 %v2799_v56  ;;  %2075 = vmatprep.subr.bf16.mxu1 %v2802_v57  ;;  %v2853_v56 = vld [vmem:[#allocation5 + $0x3b4] ss:$108 sps:$4 sm:$0xff]   ;;  %v2856_v57 = vld [vmem:[#allocation5 + $0x3bc] ss:$108 sps:$4 sm:$0xff]  }
 0x155   :  { %2035 = vmatpush1.bf16.xpose.msra.mxu0 %v2797_v58  ;;  %2076 = vmatpush1.bf16.xpose.msra.mxu1 %v2800_v59  ;;  %v2851_v58 = vld [vmem:[#allocation5 + $0x3b0] ss:$108 sps:$4 sm:$0xff]   ;;  %v2854_v59 = vld [vmem:[#allocation5 + $0x3b8] ss:$108 sps:$4 sm:$0xff]  }
 0x156   :  { %2036 = vmatprep.subr.bf16.mxu0 %v2805_v60  ;;  %2077 = vmatprep.subr.bf16.mxu1 %v2808_v61  ;;  %v2859_v60 = vld [vmem:[#allocation5 + $0x2dc] ss:$108 sps:$4 sm:$0xff]   ;;  %v2862_v61 = vld [vmem:[#allocation5 + $0x2e4] ss:$108 sps:$4 sm:$0xff]  }
 0x15d   :  { %2037 = vmatpush1.bf16.xpose.msra.mxu0 %v2803_v62  ;;  %2078 = vmatpush1.bf16.xpose.msra.mxu1 %v2806_v63  ;;  %v2857_v62 = vld [vmem:[#allocation5 + $0x2d8] ss:$108 sps:$4 sm:$0xff]   ;;  %v2860_v63 = vld [vmem:[#allocation5 + $0x2e0] ss:$108 sps:$4 sm:$0xff]  }
 0x15e   :  { %2038 = vmatprep.subr.bf16.mxu0 %v2811_v0  ;;  %2079 = vmatprep.subr.bf16.mxu1 %v2814_v1  ;;  %v2865_v0 = vld [vmem:[#allocation5 + $0x204] ss:$108 sps:$4 sm:$0xff]   ;;  %v2868_v1 = vld [vmem:[#allocation5 + $0x20c] ss:$108 sps:$4 sm:$0xff]  }
 0x165   :  { %2039 = vmatpush1.bf16.xpose.msra.mxu0 %v2809_v2  ;;  %2080 = vmatpush1.bf16.xpose.msra.mxu1 %v2812_v3  ;;  %v2863_v2 = vld [vmem:[#allocation5 + $0x200] ss:$108 sps:$4 sm:$0xff]   ;;  %v2866_v3 = vld [vmem:[#allocation5 + $0x208] ss:$108 sps:$4 sm:$0xff]  }
 0x166   :  { %2040 = vmatprep.subr.bf16.mxu0 %v2817_v4  ;;  %2081 = vmatprep.subr.bf16.mxu1 %v2820_v5  ;;  %v2871_v4 = vld [vmem:[#allocation5 + $0x12c] ss:$108 sps:$4 sm:$0xff]   ;;  %v2874_v5 = vld [vmem:[#allocation5 + $0x134] ss:$108 sps:$4 sm:$0xff]  }
 0x16c   :  { %v1816_v11 = vpop.f32.mrf.mxu0  ;;  %v1857_v12 = vpop.f32.mrf.mxu1 }
 0x16d   :  { %v1817_v13 = vadd.f32 %v1816_v11, %v3086_v14  ;;  %2041 = vmatpush1.bf16.xpose.msra.mxu0 %v2815_v6  ;;  %2082 = vmatpush1.bf16.xpose.msra.mxu1 %v2818_v7  ;;  %v2832_v14 = vld [vmem:[#allocation5 + $0x70c] ss:$108 sps:$4 sm:$0xff]   ;;  %v2869_v6 = vld [vmem:[#allocation5 + $0x128] ss:$108 sps:$4 sm:$0xff]   ;;  %v2872_v7 = vld [vmem:[#allocation5 + $0x130] ss:$108 sps:$4 sm:$0xff]  }
 0x16e   :  { %v1818_v18 = vpop.f32.mrf.mxu0  ;;  %v1859_v19 = vpop.f32.mrf.mxu1  ;;  %2042 = vmatprep.subr.bf16.mxu0 %v2823_v8  ;;  %2083 = vmatprep.subr.bf16.mxu1 %v2826_v9  ;;  %v2877_v8 = vld [vmem:[#allocation5 + $0x54] ss:$108 sps:$4 sm:$0xff]   ;;  %v2880_v9 = vld [vmem:[#allocation5 + $0x5c] ss:$108 sps:$4 sm:$0xff]  }
 0x16f   :  { %v3101_v21 = vadd.f32 %v1857_v12, %v1817_v13  ;;  %v1819_v23 = vadd.f32 %v1818_v18, %v3088_v22  ;;  %v117_v22 = vrot.slane %v3094_v37, %v3038_v44 }
 0x170   :  { %v1820_v24 = vpop.f32.mrf.mxu0  ;;  %v1861_v25 = vpop.f32.mrf.mxu1 }
 0x171   :  { %v3104_v26 = vadd.f32 %v1859_v19, %v1819_v23  ;;  %v201_v43 = vpack.c.bf16 %v117_v22, %v117_v22  ;;  %v141_v22 = vrot.slane %v3094_v37, %v3061_v33  ;;  %v2891_v33 = vld [vmem:[#allocation5 + $0x570] ss:$108 sps:$4 sm:$0xff]  }
 0x172   :  { %v1821_v29 = vpop.f32.mrf.mxu0  ;;  %v1862_v30 = vpop.f32.mrf.mxu1 }
 0x173   :  { %v2875_v29 = vld [vmem:[#allocation5 + $0x50] ss:$108 sps:$4 sm:$0xff]   ;;  %v2878_v30 = vld [vmem:[#allocation5 + $0x58] ss:$108 sps:$4 sm:$0xff]  }
 0x175   :  { %2043 = vmatpush1.bf16.xpose.msra.mxu0 %v2821_v27  ;;  %2084 = vmatpush1.bf16.xpose.msra.mxu1 %v2824_v28 }
 0x176   :  { %2058 = vmatprep.subr.bf16.mxu0 %v2829_v31  ;;  %2099 = vmatprep.subr.bf16.mxu1 %v2832_v14 }
 0x17d   :  { %2059 = vmatpush2.bf16.xpose.msra.mxu0 %v2827_v34  ;;  %2100 = vmatpush2.bf16.xpose.msra.mxu1 %v2830_v35  ;;  %v2883_v34 = vld [vmem:[#allocation5 + $0x714] ss:$108 sps:$4 sm:$0xff]   ;;  %v2881_v35 = vld [vmem:[#allocation5 + $0x710] ss:$108 sps:$4 sm:$0xff]  }
 0x17e   :  { %2110 = vmatprep.subr.bf16.mxu0 %v2835_v36  ;;  %2151 = vmatprep.subr.bf16.mxu1 %v2838_v38  ;;  %v2884_v36 = vld [vmem:[#allocation5 + $0x718] ss:$108 sps:$4 sm:$0xff]  }
 0x17f   :  { %v2889_v38 = vld [vmem:[#allocation5 + $0x64c] ss:$108 sps:$4 sm:$0xff]  }
 0x184   :  { %2061 = vmatmul.mubr.bf16.vlgmr.msra.gmra.mxu0 %v201_v43  ;;  %2102 = vmatmul.mubr.bf16.vlgmr.msra.gmra.mxu1 %v203_v46  ;;  %v207_v46 = vpack.c.bf16 %v141_v22, %v141_v22 }
 0x185   :  { %2111 = vmatpush1.bf16.xpose.msra.mxu0 %v2833_v47  ;;  %2152 = vmatpush1.bf16.xpose.msra.mxu1 %v2836_v48  ;;  %v2887_v47 = vld [vmem:[#allocation5 + $0x648] ss:$108 sps:$4 sm:$0xff]   ;;  %v2890_v48 = vld [vmem:[#allocation5 + $0x650] ss:$108 sps:$4 sm:$0xff]  }
 0x186   :  { %2112 = vmatprep.subr.bf16.mxu0 %v2841_v51  ;;  %2153 = vmatprep.subr.bf16.mxu1 %v2844_v40  ;;  %v2893_v51 = vld [vmem:[#allocation5 + $0x574] ss:$108 sps:$4 sm:$0xff]   ;;  %v2897_v40 = vld [vmem:[#allocation5 + $0x49c] ss:$108 sps:$4 sm:$0xff]  }
 0x187   :  { %2142 = vmatprep.mubr.bf16.mxu0 %v206_v52  ;;  %2183 = vmatprep.mubr.bf16.mxu1 %v208_v53  ;;  %v2898_v52 = vld [vmem:[#allocation5 + $0x4a0] ss:$108 sps:$4 sm:$0xff]   ;;  %v2901_v53 = vld [vmem:[#allocation5 + $0x3c4] ss:$108 sps:$4 sm:$0xff]  }
 0x18d   :  { %2113 = vmatpush1.bf16.xpose.msra.mxu0 %v2839_v49  ;;  %2154 = vmatpush1.bf16.xpose.msra.mxu1 %v2842_v20  ;;  %v2899_v49 = vld [vmem:[#allocation5 + $0x3c0] ss:$108 sps:$4 sm:$0xff]   ;;  %v2902_v20 = vld [vmem:[#allocation5 + $0x3c8] ss:$108 sps:$4 sm:$0xff]  }
 0x18e   :  { %2114 = vmatprep.subr.bf16.mxu0 %v2847_v17  ;;  %2155 = vmatprep.subr.bf16.mxu1 %v2850_v50  ;;  %v2905_v17 = vld [vmem:[#allocation5 + $0x2ec] ss:$108 sps:$4 sm:$0xff]   ;;  %v2903_v50 = vld [vmem:[#allocation5 + $0x2e8] ss:$108 sps:$4 sm:$0xff]  }
 0x195   :  { %2115 = vmatpush1.bf16.xpose.msra.mxu0 %v2845_v54  ;;  %2156 = vmatpush1.bf16.xpose.msra.mxu1 %v2848_v55  ;;  %v2906_v54 = vld [vmem:[#allocation5 + $0x2f0] ss:$108 sps:$4 sm:$0xff]   ;;  %v2909_v55 = vld [vmem:[#allocation5 + $0x214] ss:$108 sps:$4 sm:$0xff]  }
 0x196   :  { %2116 = vmatprep.subr.bf16.mxu0 %v2853_v56  ;;  %2157 = vmatprep.subr.bf16.mxu1 %v2856_v57  ;;  %v2907_v56 = vld [vmem:[#allocation5 + $0x210] ss:$108 sps:$4 sm:$0xff]   ;;  %v2910_v57 = vld [vmem:[#allocation5 + $0x218] ss:$108 sps:$4 sm:$0xff]  }
 0x19d   :  { %2117 = vmatpush1.bf16.xpose.msra.mxu0 %v2851_v58  ;;  %2158 = vmatpush1.bf16.xpose.msra.mxu1 %v2854_v59  ;;  %v2913_v58 = vld [vmem:[#allocation5 + $0x13c] ss:$108 sps:$4 sm:$0xff]   ;;  %v2911_v59 = vld [vmem:[#allocation5 + $0x138] ss:$108 sps:$4 sm:$0xff]  }
 0x19e   :  { %2118 = vmatprep.subr.bf16.mxu0 %v2859_v60  ;;  %2159 = vmatprep.subr.bf16.mxu1 %v2862_v61  ;;  %v2914_v60 = vld [vmem:[#allocation5 + $0x140] ss:$108 sps:$4 sm:$0xff]   ;;  %v2917_v61 = vld [vmem:[#allocation5 + $0x64] ss:$108 sps:$4 sm:$0xff]  }
 0x1a5   :  { %2119 = vmatpush1.bf16.xpose.msra.mxu0 %v2857_v62  ;;  %2160 = vmatpush1.bf16.xpose.msra.mxu1 %v2860_v63 }
 0x1a6   :  { %2120 = vmatprep.subr.bf16.mxu0 %v2865_v0  ;;  %2161 = vmatprep.subr.bf16.mxu1 %v2868_v1 }
 0x1ad   :  { %2121 = vmatpush1.bf16.xpose.msra.mxu0 %v2863_v2  ;;  %2162 = vmatpush1.bf16.xpose.msra.mxu1 %v2866_v3 }
 0x1ae   :  { %2122 = vmatprep.subr.bf16.mxu0 %v2871_v4  ;;  %2163 = vmatprep.subr.bf16.mxu1 %v2874_v5 }
 0x1b4   :  { %v1898_v11 = vpop.f32.mrf.mxu0  ;;  %v1939_v12 = vpop.f32.mrf.mxu1 }
 0x1b5   :  { %v1899_v13 = vadd.f32 %v1898_v11, %v3101_v21  ;;  %2123 = vmatpush1.bf16.xpose.msra.mxu0 %v2869_v6  ;;  %2164 = vmatpush1.bf16.xpose.msra.mxu1 %v2872_v7  ;;  %v2886_v21 = vld [vmem:[#allocation5 + $0x71c] ss:$108 sps:$4 sm:$0xff]  }
 0x1b6   :  { %v1900_v18 = vpop.f32.mrf.mxu0  ;;  %v1941_v19 = vpop.f32.mrf.mxu1  ;;  %2124 = vmatprep.subr.bf16.mxu0 %v2877_v8  ;;  %2165 = vmatprep.subr.bf16.mxu1 %v2880_v9  ;;  %v2915_v8 = vld [vmem:[#allocation5 + $0x60] ss:$108 sps:$4 sm:$0xff]   ;;  %v2918_v9 = vld [vmem:[#allocation5 + $0x68] ss:$108 sps:$4 sm:$0xff]  }
 0x1b7   :  { %v3115_v23 = vadd.f32 %v1939_v12, %v1899_v13  ;;  %v1901_v24 = vadd.f32 %v1900_v18, %v3104_v26  ;;  %v133_v26 = vrot.slane %v3094_v37, %v3058_v32  ;;  %v210_v32 = vpack.c.bf16 %v153_v42, %v153_v42  ;;  %v2894_v37 = vld [vmem:[#allocation5 + $0x578] ss:$108 sps:$4 sm:$0xff]   ;;  %v2919_v18 = vld [vmem:[#allocation5 + $0x720] ss:$108 sps:$4 sm:$0xff]  }
 0x1b8   :  { %v1902_v25 = vpop.f32.mrf.mxu0  ;;  %v1943_v27 = vpop.f32.mrf.mxu1  ;;  %v2921_v13 = vld [vmem:[#allocation5 + $0x724] ss:$108 sps:$4 sm:$0xff]  }
 0x1b9   :  { %v3118_v28 = vadd.f32 %v1941_v19, %v1901_v24  ;;  %v205_v43 = vpack.c.bf16 %v133_v26, %v133_v26  ;;  %v2922_v19 = vld [vmem:[#allocation5 + $0x728] ss:$108 sps:$4 sm:$0xff]   ;;  %v157_v24 = vrot.slane %v3124_v39, %v3041_v45 }
 0x1ba   :  { %v1903_v31 = vpop.f32.mrf.mxu0  ;;  %v1944_v14 = vpop.f32.mrf.mxu1 }
 0x1bb   :  { %v211_v27 = vpack.c.bf16 %v157_v24, %v157_v24 }
 0x1bd   :  { %2125 = vmatpush1.bf16.xpose.msra.mxu0 %v2875_v29  ;;  %2166 = vmatpush1.bf16.xpose.msra.mxu1 %v2878_v30 }
 0x1be   :  { %2140 = vmatprep.subr.bf16.mxu0 %v2883_v34  ;;  %2181 = vmatprep.subr.bf16.mxu1 %v2886_v21 }
 0x1c5   :  { %2141 = vmatpush2.bf16.xpose.msra.mxu0 %v2881_v35  ;;  %2182 = vmatpush2.bf16.xpose.msra.mxu1 %v2884_v36 }
 0x1c6   :  { %2192 = vmatprep.subr.bf16.mxu0 %v2889_v38  ;;  %2233 = vmatprep.subr.bf16.mxu1 %v2993_v41 }
 0x1cc   :  { %2143 = vmatmul.mubr.bf16.vlgmr.msra.gmra.mxu0 %v205_v43  ;;  %2184 = vmatmul.mubr.bf16.vlgmr.msra.gmra.mxu1 %v207_v46 }
 0x1cd   :  { %2193 = vmatpush1.bf16.xpose.msra.mxu0 %v2887_v47  ;;  %2234 = vmatpush1.bf16.xpose.msra.mxu1 %v2890_v48 }
 0x1ce   :  { %2194 = vmatprep.subr.bf16.mxu0 %v2893_v51  ;;  %2235 = vmatprep.subr.bf16.mxu1 %v2993_v41 }
 0x1cf   :  { %2224 = vmatprep.mubr.bf16.mxu0 %v210_v32  ;;  %2265 = vmatprep.mubr.bf16.mxu1 %v2993_v41 }
 0x1d5   :  { %2195 = vmatpush1.bf16.xpose.msra.mxu0 %v2891_v33  ;;  %2236 = vmatpush1.bf16.xpose.msra.mxu1 %v2894_v37  ;;  %v2994_v37 = vmov 1966171168  }
 0x1d6   :  { %2196 = vmatprep.subr.bf16.mxu0 %v2897_v40  ;;  %2237 = vmatprep.subr.bf16.mxu1 %v2993_v41  ;;  %v2278_v40 = vunpack.c.l.s4 %v2994_v37 }
 0x1dd   :  { %2197 = vmatpush1.bf16.xpose.msra.mxu0 %v2895_v16  ;;  %2238 = vmatpush1.bf16.xpose.msra.mxu1 %v2898_v52 }
 0x1de   :  { %2198 = vmatprep.subr.bf16.mxu0 %v2901_v53  ;;  %2239 = vmatprep.subr.bf16.mxu1 %v2993_v41 }
 0x1e5   :  { %2199 = vmatpush1.bf16.xpose.msra.mxu0 %v2899_v49  ;;  %2240 = vmatpush1.bf16.xpose.msra.mxu1 %v2902_v20  ;;  %v2279_v49 = vunpack.c.0.s8 %v2278_v40 }
 0x1e6   :  { %2200 = vmatprep.subr.bf16.mxu0 %v2905_v17  ;;  %2241 = vmatprep.subr.bf16.mxu1 %v2993_v41 }
 0x1ed   :  { %2201 = vmatpush1.bf16.xpose.msra.mxu0 %v2903_v50  ;;  %2242 = vmatpush1.bf16.xpose.msra.mxu1 %v2906_v54 }
 0x1ee   :  { %2202 = vmatprep.subr.bf16.mxu0 %v2909_v55  ;;  %2243 = vmatprep.subr.bf16.mxu1 %v2993_v41 }
 0x1f5   :  { %2203 = vmatpush1.bf16.xpose.msra.mxu0 %v2907_v56  ;;  %2244 = vmatpush1.bf16.xpose.msra.mxu1 %v2910_v57 }
 0x1f6   :  { %2204 = vmatprep.subr.bf16.mxu0 %v2913_v58  ;;  %2245 = vmatprep.subr.bf16.mxu1 %v2993_v41  ;;  %v2282_v58 = vsub.s32 %v2279_v49, %v3023_v15 }
 0x1fc   :  { %v1980_v62 = vpop.f32.mrf.mxu0  ;;  %v2021_v63 = vpop.f32.mrf.mxu1 }
 0x1fd   :  { %v1981_v0 = vadd.f32 %v1980_v62, %v3115_v23  ;;  %2205 = vmatpush1.bf16.xpose.msra.mxu0 %v2911_v59  ;;  %2246 = vmatpush1.bf16.xpose.msra.mxu1 %v2914_v60  ;;  %v149_v23 = vrot.slane %v3124_v39, %v3038_v44 }
 0x1fe   :  { %v1982_v1 = vpop.f32.mrf.mxu0  ;;  %v2023_v2 = vpop.f32.mrf.mxu1  ;;  %2206 = vmatprep.subr.bf16.mxu0 %v2917_v61  ;;  %2247 = vmatprep.subr.bf16.mxu1 %v2993_v41 }
 0x1ff   :  { %v2022_v3 = vadd.f32 %v2021_v63, %v1981_v0  ;;  %v1983_v4 = vadd.f32 %v1982_v1, %v3118_v28  ;;  %v209_v25 = vpack.c.bf16 %v149_v23, %v149_v23 }
 0x200   :  { %v1984_v5 = vpop.f32.mrf.mxu0  ;;  %v2025_v6 = vpop.f32.mrf.mxu1 }
 0x201   :  { %v2024_v7 = vadd.f32 %v2023_v2, %v1983_v4 }
 0x202   :  { %v1985_v11 = vpop.f32.mrf.mxu0  ;;  %v2026_v12 = vpop.f32.mrf.mxu1 }
 0x205   :  { %2207 = vmatpush1.bf16.xpose.msra.mxu0 %v2915_v8  ;;  %2248 = vmatpush1.bf16.xpose.msra.mxu1 %v2918_v9 }
 0x206   :  { %2222 = vmatprep.subr.bf16.mxu0 %v2921_v13  ;;  %2263 = vmatprep.subr.bf16.mxu1 %v2993_v41 }
 0x20d   :  { %2223 = vmatpush2.bf16.xpose.msra.mxu0 %v2919_v18  ;;  %2264 = vmatpush2.bf16.xpose.msra.mxu1 %v2922_v19 }
 0x214   :  { %2225 = vmatmul.mubr.bf16.vlgmr.msra.gmra.mxu0 %v209_v25  ;;  %2266 = vmatmul.mubr.bf16.vlgmr.msra.gmra.mxu1 %v211_v27 }
 0x244   :  { %v2062_v28 = vpop.f32.mrf.mxu0  ;;  %v2103_v29 = vpop.f32.mrf.mxu1 }
 0x245   :  { %v2063_v30 = vadd.f32 %v2062_v28, %v2022_v3 }
 0x246   :  { %v2064_v31 = vpop.f32.mrf.mxu0  ;;  %v2105_v14 = vpop.f32.mrf.mxu1 }
 0x247   :  { %v2104_v34 = vadd.f32 %v2103_v29, %v2063_v30  ;;  %v2065_v21 = vadd.f32 %v2064_v31, %v2024_v7 }
 0x248   :  { %v2066_v35 = vpop.f32.mrf.mxu0  ;;  %v2107_v36 = vpop.f32.mrf.mxu1 }
 0x249   :  { %v2106_v38 = vadd.f32 %v2105_v14, %v2065_v21 }
 0x24a   :  { %v2067_v44 = vpop.f32.mrf.mxu0  ;;  %v2108_v26 = vpop.f32.mrf.mxu1 }
 0x28c   :  { %v2144_v22 = vpop.f32.mrf.mxu0  ;;  %v2185_v45 = vpop.f32.mrf.mxu1 }
 0x28d   :  { %v2145_v39 = vadd.f32 %v2144_v22, %v2104_v34 }
 0x28e   :  { %v2146_v41 = vpop.f32.mrf.mxu0  ;;  %v2187_v42 = vpop.f32.mrf.mxu1 }
 0x28f   :  { %v2186_v43 = vadd.f32 %v2185_v45, %v2145_v39  ;;  %v2147_v46 = vadd.f32 %v2146_v41, %v2106_v38 }
 0x290   :  { %v2148_v47 = vpop.f32.mrf.mxu0  ;;  %v2189_v48 = vpop.f32.mrf.mxu1 }
 0x291   :  { %v2188_v51 = vadd.f32 %v2187_v42, %v2147_v46 }
 0x292   :  { %v2149_v32 = vpop.f32.mrf.mxu0  ;;  %v2190_v33 = vpop.f32.mrf.mxu1 }
 0x2d4   :  { %v2226_v16 = vpop.f32.mrf.mxu0  ;;  %v2267_v52 = vpop.f32.mrf.mxu1 }
 0x2d5   :  { %v2227_v53 = vadd.f32 %v2226_v16, %v2186_v43 }
 0x2d6   :  { %v2228_v20 = vpop.f32.mrf.mxu0  ;;  %v2269_v17 = vpop.f32.mrf.mxu1 }
 0x2d7   :  { %v2229_v50 = vadd.f32 %v2228_v20, %v2188_v51  ;;  %v2268_v56 = vadd.f32 %v2267_v52, %v2227_v53 }
 0x2d8   :  { %v2230_v54 = vpop.f32.mrf.mxu0  ;;  %v2271_v55 = vpop.f32.mrf.mxu1 }
 0x2d9   :  { %v2270_v57 = vadd.f32 %v2269_v17, %v2229_v50 }
 0x2da   :  { %v2231_v59 = vpop.f32.mrf.mxu0  ;;  %v2272_v60 = vpop.f32.mrf.mxu1 }
 0x2db   :  { %v2276_v61 = vcombine.low %v2268_v56, %v2270_v57 }
 0x2dd   :  { %v2283_v62 = vrot.slane %v2276_v61, %v2282_v58 }
 0x2df   :  { %v2290_v63 = vrot.slane %v2283_v62, %v2282_v58 }
 0x2e1   :  { %2296 = vst.msk [vmem:[#allocation7] sm:$0x3] %vm2294_vm0, %v2290_v63 }
 0x2e2   :  { %2974 = shalt.err (!%p2971_p0)
}
 0x2e3   :  { %2306 = dma.vmem_to_hbm [thread:$0]  %s2304_s25, 32, %s3152_s3, [#allocation4]  }
 0x2e4   :  { %2987 = dma.done.wait [#allocation4], 32  }
 0x2e5   :  { %2988 = vsyncadd [#allocation4], 4294967264 }
 0x2e6   :  { %2310 = vsyncpa [#allocation3], 1 }
 0x2e7   :  { %2311 = vsyncpa [#allocation6], 1 }
 0x2e8   :  { %2312 = vsyncpa [#allocation4], 1 }

</bundles_post_ra>
